<compile_context>
chip_gen: v7x
topology: tpu7x:2x2x1
jax: 0.10.0
libtpu: 0.0.40
codegen_flags: <defaults>
</compile_context>

<pallas_src>
import numpy as np

import jax
import jax.numpy as jnp
from jax.experimental import pallas as pl
from jax.experimental.pallas import tpu as pltpu

LANE = 128  # TPU lane width; channel / class dims are padded to this.


def _make_fused_cnn_kernel(n_layers, ksize, stride, l_outs, c_pad, nc_pad, l_final):
    """Builds the fused kernel.  One grid step == one batch sample.

    Ref order: x, (w0, b0), ..., (w_{L-1}, b_{L-1}), wd, bd, out, scratch_0..L-1
    """

    def kernel(*refs):
        x_ref = refs[0]                                  # (L_in, c_pad)  f32
        conv_refs = refs[1:1 + 2 * n_layers]             # per layer: w (K,c_pad,c_pad) bf16, b (1,c_pad) f32
        wd_ref = refs[1 + 2 * n_layers]                  # (l_final, c_pad, nc_pad) bf16
        bd_ref = refs[2 + 2 * n_layers]                  # (1, nc_pad) f32
        out_ref = refs[3 + 2 * n_layers]                 # (1, nc_pad) f32
        scratch = refs[4 + 2 * n_layers:]                # per layer: (l_out, c_pad) f32

        # ---- Conv1d + ReLU stack, activations resident in VMEM ----
        src = x_ref
        for li in range(n_layers):
            w_ref = conv_refs[2 * li]
            b_ref = conv_refs[2 * li + 1]
            l_out = l_outs[li]
            acc = jnp.zeros((l_out, c_pad), jnp.float32)
            for t in range(ksize):
                # Shifted (strided) view of the input rows for this kernel tap.
                if stride == 1:
                    sl = pl.ds(t, l_out)
                else:
                    sl = pl.ds(t, l_out, stride)
                xt = src[sl, :].astype(jnp.bfloat16)          # (l_out, c_pad) bf16
                acc = acc + jnp.dot(xt, w_ref[t],             # MXU, f32 accumulate
                                    preferred_element_type=jnp.float32)
            act = jnp.maximum(acc + b_ref[...], 0.0)          # bias + ReLU in f32 (VPU)
            scratch[li][...] = act
            src = scratch[li]

        # ---- Dense layer ----
        # torch's out.view(B, -1) flattens NCL as f = c * L_final + l; the dense
        # weight was pre-reshaped to (L_final, c_pad, nc_pad) in the wrapper so
        # no in-kernel flatten/transpose is needed.
        act_last = src[...]                                   # (l_final, c_pad) f32
        logits = bd_ref[...]                                  # (1, nc_pad) f32
        for l in range(l_final):
            row = act_last[l:l + 1, :].astype(jnp.bfloat16)   # (1, c_pad)
            logits = logits + jnp.dot(row, wd_ref[l],
                                      preferred_element_type=jnp.float32)
        out_ref[...] = logits.astype(out_ref.dtype)

    return kernel


def cnn_forward(x, conv_params, dense_params, stride):
    """Fused CNN forward. x: (B, C_in, L_in) float32 (PyTorch NCL). -> (B, n_classes) f32."""
    B, c_in, l_in = x.shape
    n_layers = len(conv_params)
    c_out, _, ksize = conv_params[0][0].shape
    wd, bd = dense_params
    n_classes = wd.shape[0]
    assert c_in <= LANE and c_out <= LANE and n_classes <= LANE

    # Per-layer output lengths (valid padding).
    l_outs = []
    l_cur = l_in
    for _ in range(n_layers):
        l_cur = (l_cur - ksize) // stride + 1
        l_outs.append(l_cur)
    l_final = l_outs[-1]
    assert wd.shape[1] == c_out * l_final, "final_layer must equal C_out * L_final"

    c_pad, nc_pad = LANE, LANE

    # ---- one-time layout prep (tiny tensors, plain JAX glue) ----
    # Input: NCL -> NLC so channels sit on lanes; pad channels to 128.
    x_nlc = jnp.transpose(x, (0, 2, 1)).astype(jnp.float32)
    x_p = jnp.zeros((B, l_in, c_pad), jnp.float32).at[:, :, :c_in].set(x_nlc)

    conv_inputs = []
    for (w, b) in conv_params:
        co, ci, kk = w.shape
        w_t = jnp.transpose(w, (2, 1, 0))                  # (K, C_in, C_out): out-ch on lanes
        w_p = (jnp.zeros((kk, c_pad, c_pad), jnp.float32)
               .at[:, :ci, :co].set(w_t).astype(jnp.bfloat16))
        b_p = jnp.zeros((1, c_pad), jnp.float32).at[0, :co].set(b)
        conv_inputs += [w_p, b_p]

    # Dense: fold torch's channel-major flatten into the weight layout once.
    wd3 = wd.reshape(n_classes, c_out, l_final).transpose(2, 1, 0)   # (L_final, C_out, n_classes)
    wd_p = (jnp.zeros((l_final, c_pad, nc_pad), jnp.float32)
            .at[:, :c_out, :n_classes].set(wd3).astype(jnp.bfloat16))
    bd_p = jnp.zeros((1, nc_pad), jnp.float32).at[0, :n_classes].set(bd)

    kernel_fn = _make_fused_cnn_kernel(n_layers, ksize, stride, tuple(l_outs),
                                       c_pad, nc_pad, l_final)

    in_specs = [pl.BlockSpec((None, l_in, c_pad), lambda i: (i, 0, 0))]
    for _ in range(n_layers):
        in_specs.append(pl.BlockSpec((ksize, c_pad, c_pad), lambda i: (0, 0, 0)))
        in_specs.append(pl.BlockSpec((1, c_pad), lambda i: (0, 0)))
    in_specs.append(pl.BlockSpec((l_final, c_pad, nc_pad), lambda i: (0, 0, 0)))
    in_specs.append(pl.BlockSpec((1, nc_pad), lambda i: (0, 0)))

    out = pl.pallas_call(
        kernel_fn,
        out_shape=jax.ShapeDtypeStruct((B, 1, nc_pad), jnp.float32),
        grid=(B,),
        in_specs=in_specs,
        out_specs=pl.BlockSpec((None, 1, nc_pad), lambda i: (i, 0, 0)),
        scratch_shapes=[pltpu.VMEM((l_outs[li], c_pad), jnp.float32)
                        for li in range(n_layers)],
        compiler_params=pltpu.CompilerParams(
            dimension_semantics=("parallel",)),
    )(x_p, *conv_inputs, wd_p, bd_p)

    return out.reshape(B, nc_pad)[:, :n_classes]


def cnn_reference(x, conv_params, dense_params, stride):
    """Plain-JAX reference mirroring the kernel math (bf16 matmul operands, f32 accum)."""
    out = jnp.transpose(x, (0, 2, 1)).astype(jnp.float32)       # (B, L, C)
    for (w, b) in conv_params:
        co, ci, k = w.shape
        B, L, _ = out.shape
        l_out = (L - k) // stride + 1
        acc = jnp.zeros((B, l_out, co), jnp.float32)
        for t in range(k):
            end = t + (l_out - 1) * stride + 1
            xt = out[:, t:end:stride, :].astype(jnp.bfloat16)
            wt = w[:, :, t].T.astype(jnp.bfloat16)              # (ci, co)
            acc = acc + jnp.einsum("blc,cd->bld", xt, wt,
                                   preferred_element_type=jnp.float32)
        out = jnp.maximum(acc + b[None, None, :], 0.0)
    B = out.shape[0]
    flat = jnp.transpose(out, (0, 2, 1)).reshape(B, -1)          # torch view(B, -1) order
    wd, bd = dense_params
    return jnp.dot(flat.astype(jnp.bfloat16), wd.T.astype(jnp.bfloat16),
                   preferred_element_type=jnp.float32) + bd


def init_params(key, in_channels, out_channels, n_layers, kernel, final_layer,
                n_classes):
    """Deterministic init mimicking PyTorch's default uniform(-1/sqrt(fan_in), ...)."""
    keys = jax.random.split(key, 2 * (n_layers + 1))
    conv_params = []
    c_in = in_channels
    for l in range(n_layers):
        fan_in = c_in * kernel
        bound = 1.0 / (fan_in ** 0.5)
        w = jax.random.uniform(keys[2 * l], (out_channels, c_in, kernel),
                               jnp.float32, -bound, bound)
        b = jax.random.uniform(keys[2 * l + 1], (out_channels,),
                               jnp.float32, -bound, bound)
        conv_params.append((w, b))
        c_in = out_channels
    bound = 1.0 / (final_layer ** 0.5)
    wd = jax.random.uniform(keys[-2], (n_classes, final_layer),
                            jnp.float32, -bound, bound)
    bd = jax.random.uniform(keys[-1], (n_classes,), jnp.float32, -bound, bound)
    return conv_params, (wd, bd)


if __name__ == "__main__":
    # Small shapes consistent with the module's constructor arguments.
    N, in_channels, out_channels, L = 2, 4, 8, 16
    n_layers, kernel, stride, n_classes = 2, 3, 2, 5

    # final_layer = C_out * L_final (the CNN's flattened feature size).
    l_cur = L
    for _ in range(n_layers):
        l_cur = (l_cur - kernel) // stride + 1
    final_layer = out_channels * l_cur  # 8 * 3 = 24

    key = jax.random.PRNGKey(0)
    kx, kp = jax.random.split(key)
    x = jax.random.normal(kx, (N, in_channels, L), jnp.float32)
    conv_params, dense_params = init_params(
        kp, in_channels, out_channels, n_layers, kernel, final_layer, n_classes)

    out = cnn_forward(x, conv_params, dense_params, stride)
    out = jax.block_until_ready(out)
    assert out.shape == (N, n_classes), out.shape
    assert out.dtype == jnp.float32

    # Self-check against a plain-JAX reference using the same bf16-operand math.
    ref = jax.block_until_ready(cnn_reference(x, conv_params, dense_params, stride))
    np.testing.assert_allclose(np.asarray(out), np.asarray(ref), rtol=1e-3, atol=1e-3)

    print("KERNEL_OK")
</pallas_src>

<mosaic_0001>
module attributes {stable_mosaic.version = 11 : i64} {
  func.func @kernel(%arg0: i32, %arg1: memref<1x16x128xf32, #tpu.memory_space<vmem>>, %arg2: memref<3x128x128xbf16, #tpu.memory_space<vmem>>, %arg3: memref<1x128xf32, #tpu.memory_space<vmem>>, %arg4: memref<3x128x128xbf16, #tpu.memory_space<vmem>>, %arg5: memref<1x128xf32, #tpu.memory_space<vmem>>, %arg6: memref<3x128x128xbf16, #tpu.memory_space<vmem>>, %arg7: memref<1x128xf32, #tpu.memory_space<vmem>>, %arg8: memref<1x1x128xf32, #tpu.memory_space<vmem>>, %arg9: memref<7x128xf32, #tpu.memory_space<vmem>>, %arg10: memref<3x128xf32, #tpu.memory_space<vmem>>) attributes {dimension_semantics = [#tpu.dimension_semantics<parallel>], iteration_bounds = array<i64: 2>, scalar_prefetch = 0 : i64, scratch_operands = 2 : i64, tpu.core_type = #tpu.core_type<tc>, window_params = [{transform_indices = @transform_0, window_bounds = array<i64: 1, 16, 128>}, {pipeline_mode = #tpu.pipeline_mode<synchronous>, transform_indices = @transform_1, window_bounds = array<i64: 3, 128, 128>}, {pipeline_mode = #tpu.pipeline_mode<synchronous>, transform_indices = @transform_2, window_bounds = array<i64: 1, 128>}, {pipeline_mode = #tpu.pipeline_mode<synchronous>, transform_indices = @transform_3, window_bounds = array<i64: 3, 128, 128>}, {pipeline_mode = #tpu.pipeline_mode<synchronous>, transform_indices = @transform_4, window_bounds = array<i64: 1, 128>}, {pipeline_mode = #tpu.pipeline_mode<synchronous>, transform_indices = @transform_5, window_bounds = array<i64: 3, 128, 128>}, {pipeline_mode = #tpu.pipeline_mode<synchronous>, transform_indices = @transform_6, window_bounds = array<i64: 1, 128>}, {transform_indices = @transform_7, window_bounds = array<i64: 1, 1, 128>}]} {
    %cst = arith.constant 0.000000e+00 : f32
    %0 = vector.broadcast %cst : f32 to vector<7x128xf32>
    %c0 = arith.constant 0 : index
    %c0_0 = arith.constant 0 : index
    %c0_1 = arith.constant 0 : index
    %1 = tpu.strided_load %arg1[%c0, %c0_0, %c0_1] {strides = array<i32: 1, 2, 1>} : memref<1x16x128xf32, #tpu.memory_space<vmem>>, vector<1x7x128xf32>
    %2 = vector.shape_cast %1 : vector<1x7x128xf32> to vector<7x128xf32>
    %3 = arith.truncf %2 : vector<7x128xf32> to vector<7x128xbf16>
    %c0_2 = arith.constant 0 : index
    %c0_3 = arith.constant 0 : index
    %c0_4 = arith.constant 0 : index
    %4 = vector.load %arg2[%c0_2, %c0_3, %c0_4] : memref<3x128x128xbf16, #tpu.memory_space<vmem>>, vector<1x128x128xbf16>
    %5 = vector.shape_cast %4 : vector<1x128x128xbf16> to vector<128x128xbf16>
    %cst_5 = arith.constant dense<0.000000e+00> : vector<7x128xf32>
    %6 = tpu.matmul %3, %5, %cst_5 {dimension_numbers = #tpu.dot_dimension_numbers<[1], [0], [0], [1], [0, 0, 1, 1], [], []>} : vector<7x128xbf16>, vector<128x128xbf16>, vector<7x128xf32> -> vector<7x128xf32>
    %7 = arith.addf %0, %6 : vector<7x128xf32>
    %c0_6 = arith.constant 0 : index
    %c1 = arith.constant 1 : index
    %c0_7 = arith.constant 0 : index
    %8 = tpu.strided_load %arg1[%c0_6, %c1, %c0_7] {strides = array<i32: 1, 2, 1>} : memref<1x16x128xf32, #tpu.memory_space<vmem>>, vector<1x7x128xf32>
    %9 = vector.shape_cast %8 : vector<1x7x128xf32> to vector<7x128xf32>
    %10 = arith.truncf %9 : vector<7x128xf32> to vector<7x128xbf16>
    %c1_8 = arith.constant 1 : index
    %c0_9 = arith.constant 0 : index
    %c0_10 = arith.constant 0 : index
    %11 = vector.load %arg2[%c1_8, %c0_9, %c0_10] : memref<3x128x128xbf16, #tpu.memory_space<vmem>>, vector<1x128x128xbf16>
    %12 = vector.shape_cast %11 : vector<1x128x128xbf16> to vector<128x128xbf16>
    %cst_11 = arith.constant dense<0.000000e+00> : vector<7x128xf32>
    %13 = tpu.matmul %10, %12, %cst_11 {dimension_numbers = #tpu.dot_dimension_numbers<[1], [0], [0], [1], [0, 0, 1, 1], [], []>} : vector<7x128xbf16>, vector<128x128xbf16>, vector<7x128xf32> -> vector<7x128xf32>
    %14 = arith.addf %7, %13 : vector<7x128xf32>
    %c0_12 = arith.constant 0 : index
    %c2 = arith.constant 2 : index
    %c0_13 = arith.constant 0 : index
    %15 = tpu.strided_load %arg1[%c0_12, %c2, %c0_13] {strides = array<i32: 1, 2, 1>} : memref<1x16x128xf32, #tpu.memory_space<vmem>>, vector<1x7x128xf32>
    %16 = vector.shape_cast %15 : vector<1x7x128xf32> to vector<7x128xf32>
    %17 = arith.truncf %16 : vector<7x128xf32> to vector<7x128xbf16>
    %c2_14 = arith.constant 2 : index
    %c0_15 = arith.constant 0 : index
    %c0_16 = arith.constant 0 : index
    %18 = vector.load %arg2[%c2_14, %c0_15, %c0_16] : memref<3x128x128xbf16, #tpu.memory_space<vmem>>, vector<1x128x128xbf16>
    %19 = vector.shape_cast %18 : vector<1x128x128xbf16> to vector<128x128xbf16>
    %cst_17 = arith.constant dense<0.000000e+00> : vector<7x128xf32>
    %20 = tpu.matmul %17, %19, %cst_17 {dimension_numbers = #tpu.dot_dimension_numbers<[1], [0], [0], [1], [0, 0, 1, 1], [], []>} : vector<7x128xbf16>, vector<128x128xbf16>, vector<7x128xf32> -> vector<7x128xf32>
    %21 = arith.addf %14, %20 : vector<7x128xf32>
    %c0_18 = arith.constant 0 : index
    %c0_19 = arith.constant 0 : index
    %22 = vector.load %arg3[%c0_18, %c0_19] : memref<1x128xf32, #tpu.memory_space<vmem>>, vector<1x128xf32>
    %23 = vector.broadcast %22 : vector<1x128xf32> to vector<7x128xf32>
    %24 = arith.addf %21, %23 : vector<7x128xf32>
    %cst_20 = arith.constant 0.000000e+00 : f32
    %25 = vector.broadcast %cst_20 : f32 to vector<7x128xf32>
    %26 = arith.maximumf %24, %25 : vector<7x128xf32>
    %c0_21 = arith.constant 0 : index
    %c0_22 = arith.constant 0 : index
    %27 = vector.load %arg9[%c0_21, %c0_22] : memref<7x128xf32, #tpu.memory_space<vmem>>, vector<7x128xf32>
    tpu.vector_store %arg9[%c0_21, %c0_22], %26 {strides = array<i32>} : memref<7x128xf32, #tpu.memory_space<vmem>>, vector<7x128xf32>,
    %cst_23 = arith.constant 0.000000e+00 : f32
    %28 = vector.broadcast %cst_23 : f32 to vector<3x128xf32>
    %c0_24 = arith.constant 0 : index
    %c0_25 = arith.constant 0 : index
    %29 = tpu.strided_load %arg9[%c0_24, %c0_25] {strides = array<i32: 2, 1>} : memref<7x128xf32, #tpu.memory_space<vmem>>, vector<3x128xf32>
    %30 = arith.truncf %29 : vector<3x128xf32> to vector<3x128xbf16>
    %c0_26 = arith.constant 0 : index
    %c0_27 = arith.constant 0 : index
    %c0_28 = arith.constant 0 : index
    %31 = vector.load %arg4[%c0_26, %c0_27, %c0_28] : memref<3x128x128xbf16, #tpu.memory_space<vmem>>, vector<1x128x128xbf16>
    %32 = vector.shape_cast %31 : vector<1x128x128xbf16> to vector<128x128xbf16>
    %cst_29 = arith.constant dense<0.000000e+00> : vector<3x128xf32>
    %33 = tpu.matmul %30, %32, %cst_29 {dimension_numbers = #tpu.dot_dimension_numbers<[1], [0], [0], [1], [0, 0, 1, 1], [], []>} : vector<3x128xbf16>, vector<128x128xbf16>, vector<3x128xf32> -> vector<3x128xf32>
    %34 = arith.addf %28, %33 : vector<3x128xf32>
    %c1_30 = arith.constant 1 : index
    %c0_31 = arith.constant 0 : index
    %35 = tpu.strided_load %arg9[%c1_30, %c0_31] {strides = array<i32: 2, 1>} : memref<7x128xf32, #tpu.memory_space<vmem>>, vector<3x128xf32>
    %36 = arith.truncf %35 : vector<3x128xf32> to vector<3x128xbf16>
    %c1_32 = arith.constant 1 : index
    %c0_33 = arith.constant 0 : index
    %c0_34 = arith.constant 0 : index
    %37 = vector.load %arg4[%c1_32, %c0_33, %c0_34] : memref<3x128x128xbf16, #tpu.memory_space<vmem>>, vector<1x128x128xbf16>
    %38 = vector.shape_cast %37 : vector<1x128x128xbf16> to vector<128x128xbf16>
    %cst_35 = arith.constant dense<0.000000e+00> : vector<3x128xf32>
    %39 = tpu.matmul %36, %38, %cst_35 {dimension_numbers = #tpu.dot_dimension_numbers<[1], [0], [0], [1], [0, 0, 1, 1], [], []>} : vector<3x128xbf16>, vector<128x128xbf16>, vector<3x128xf32> -> vector<3x128xf32>
    %40 = arith.addf %34, %39 : vector<3x128xf32>
    %c2_36 = arith.constant 2 : index
    %c0_37 = arith.constant 0 : index
    %41 = tpu.strided_load %arg9[%c2_36, %c0_37] {strides = array<i32: 2, 1>} : memref<7x128xf32, #tpu.memory_space<vmem>>, vector<3x128xf32>
    %42 = arith.truncf %41 : vector<3x128xf32> to vector<3x128xbf16>
    %c2_38 = arith.constant 2 : index
    %c0_39 = arith.constant 0 : index
    %c0_40 = arith.constant 0 : index
    %43 = vector.load %arg4[%c2_38, %c0_39, %c0_40] : memref<3x128x128xbf16, #tpu.memory_space<vmem>>, vector<1x128x128xbf16>
    %44 = vector.shape_cast %43 : vector<1x128x128xbf16> to vector<128x128xbf16>
    %cst_41 = arith.constant dense<0.000000e+00> : vector<3x128xf32>
    %45 = tpu.matmul %42, %44, %cst_41 {dimension_numbers = #tpu.dot_dimension_numbers<[1], [0], [0], [1], [0, 0, 1, 1], [], []>} : vector<3x128xbf16>, vector<128x128xbf16>, vector<3x128xf32> -> vector<3x128xf32>
    %46 = arith.addf %40, %45 : vector<3x128xf32>
    %c0_42 = arith.constant 0 : index
    %c0_43 = arith.constant 0 : index
    %47 = vector.load %arg5[%c0_42, %c0_43] : memref<1x128xf32, #tpu.memory_space<vmem>>, vector<1x128xf32>
    %48 = vector.broadcast %47 : vector<1x128xf32> to vector<3x128xf32>
    %49 = arith.addf %46, %48 : vector<3x128xf32>
    %cst_44 = arith.constant 0.000000e+00 : f32
    %50 = vector.broadcast %cst_44 : f32 to vector<3x128xf32>
    %51 = arith.maximumf %49, %50 : vector<3x128xf32>
    %c0_45 = arith.constant 0 : index
    %c0_46 = arith.constant 0 : index
    %52 = vector.load %arg10[%c0_45, %c0_46] : memref<3x128xf32, #tpu.memory_space<vmem>>, vector<3x128xf32>
    tpu.vector_store %arg10[%c0_45, %c0_46], %51 {strides = array<i32>} : memref<3x128xf32, #tpu.memory_space<vmem>>, vector<3x128xf32>,
    %c0_47 = arith.constant 0 : index
    %c0_48 = arith.constant 0 : index
    %53 = vector.load %arg10[%c0_47, %c0_48] : memref<3x128xf32, #tpu.memory_space<vmem>>, vector<3x128xf32>
    %c0_49 = arith.constant 0 : index
    %c0_50 = arith.constant 0 : index
    %54 = vector.load %arg7[%c0_49, %c0_50] : memref<1x128xf32, #tpu.memory_space<vmem>>, vector<1x128xf32>
    %55 = vector.extract_strided_slice %53 {offsets = [0, 0], sizes = [1, 128], strides = [1, 1]} : vector<3x128xf32> to vector<1x128xf32>
    %56 = arith.truncf %55 : vector<1x128xf32> to vector<1x128xbf16>
    %c0_51 = arith.constant 0 : index
    %c0_52 = arith.constant 0 : index
    %c0_53 = arith.constant 0 : index
    %57 = vector.load %arg6[%c0_51, %c0_52, %c0_53] : memref<3x128x128xbf16, #tpu.memory_space<vmem>>, vector<1x128x128xbf16>
    %58 = vector.shape_cast %57 : vector<1x128x128xbf16> to vector<128x128xbf16>
    %cst_54 = arith.constant dense<0.000000e+00> : vector<1x128xf32>
    %59 = tpu.matmul %56, %58, %cst_54 {dimension_numbers = #tpu.dot_dimension_numbers<[1], [0], [0], [1], [0, 0, 1, 1], [], []>} : vector<1x128xbf16>, vector<128x128xbf16>, vector<1x128xf32> -> vector<1x128xf32>
    %60 = arith.addf %54, %59 : vector<1x128xf32>
    %61 = vector.extract_strided_slice %53 {offsets = [1, 0], sizes = [1, 128], strides = [1, 1]} : vector<3x128xf32> to vector<1x128xf32>
    %62 = arith.truncf %61 : vector<1x128xf32> to vector<1x128xbf16>
    %c1_55 = arith.constant 1 : index
    %c0_56 = arith.constant 0 : index
    %c0_57 = arith.constant 0 : index
    %63 = vector.load %arg6[%c1_55, %c0_56, %c0_57] : memref<3x128x128xbf16, #tpu.memory_space<vmem>>, vector<1x128x128xbf16>
    %64 = vector.shape_cast %63 : vector<1x128x128xbf16> to vector<128x128xbf16>
    %cst_58 = arith.constant dense<0.000000e+00> : vector<1x128xf32>
    %65 = tpu.matmul %62, %64, %cst_58 {dimension_numbers = #tpu.dot_dimension_numbers<[1], [0], [0], [1], [0, 0, 1, 1], [], []>} : vector<1x128xbf16>, vector<128x128xbf16>, vector<1x128xf32> -> vector<1x128xf32>
    %66 = arith.addf %60, %65 : vector<1x128xf32>
    %67 = vector.extract_strided_slice %53 {offsets = [2, 0], sizes = [1, 128], strides = [1, 1]} : vector<3x128xf32> to vector<1x128xf32>
    %68 = arith.truncf %67 : vector<1x128xf32> to vector<1x128xbf16>
    %c2_59 = arith.constant 2 : index
    %c0_60 = arith.constant 0 : index
    %c0_61 = arith.constant 0 : index
    %69 = vector.load %arg6[%c2_59, %c0_60, %c0_61] : memref<3x128x128xbf16, #tpu.memory_space<vmem>>, vector<1x128x128xbf16>
    %70 = vector.shape_cast %69 : vector<1x128x128xbf16> to vector<128x128xbf16>
    %cst_62 = arith.constant dense<0.000000e+00> : vector<1x128xf32>
    %71 = tpu.matmul %68, %70, %cst_62 {dimension_numbers = #tpu.dot_dimension_numbers<[1], [0], [0], [1], [0, 0, 1, 1], [], []>} : vector<1x128xbf16>, vector<128x128xbf16>, vector<1x128xf32> -> vector<1x128xf32>
    %72 = arith.addf %66, %71 : vector<1x128xf32>
    %c0_63 = arith.constant 0 : index
    %c0_64 = arith.constant 0 : index
    %c0_65 = arith.constant 0 : index
    %73 = vector.load %arg8[%c0_63, %c0_64, %c0_65] : memref<1x1x128xf32, #tpu.memory_space<vmem>>, vector<1x1x128xf32>
    %74 = vector.shape_cast %73 : vector<1x1x128xf32> to vector<1x128xf32>
    %75 = vector.shape_cast %72 : vector<1x128xf32> to vector<1x1x128xf32>
    tpu.vector_store %arg8[%c0_63, %c0_64, %c0_65], %75 {strides = array<i32>} : memref<1x1x128xf32, #tpu.memory_space<vmem>>, vector<1x1x128xf32>,
    return
  }
  func.func @transform_0(%arg0: i32) -> (i32, i32, i32) {
    %c0_i32 = arith.constant 0 : i32
    %c0_i32_0 = arith.constant 0 : i32
    %c0_i32_1 = arith.constant 0 : i32
    return %arg0, %c0_i32, %c0_i32_0 : i32, i32, i32
  }
  func.func @transform_1(%arg0: i32) -> (i32, i32, i32) {
    %c0_i32 = arith.constant 0 : i32
    %c0_i32_0 = arith.constant 0 : i32
    %c0_i32_1 = arith.constant 0 : i32
    %c0_i32_2 = arith.constant 0 : i32
    return %c0_i32, %c0_i32_0, %c0_i32_1 : i32, i32, i32
  }
  func.func @transform_2(%arg0: i32) -> (i32, i32) {
    %c0_i32 = arith.constant 0 : i32
    %c0_i32_0 = arith.constant 0 : i32
    %c0_i32_1 = arith.constant 0 : i32
    return %c0_i32, %c0_i32_0 : i32, i32
  }
  func.func @transform_3(%arg0: i32) -> (i32, i32, i32) {
    %c0_i32 = arith.constant 0 : i32
    %c0_i32_0 = arith.constant 0 : i32
    %c0_i32_1 = arith.constant 0 : i32
    %c0_i32_2 = arith.constant 0 : i32
    return %c0_i32, %c0_i32_0, %c0_i32_1 : i32, i32, i32
  }
  func.func @transform_4(%arg0: i32) -> (i32, i32) {
    %c0_i32 = arith.constant 0 : i32
    %c0_i32_0 = arith.constant 0 : i32
    %c0_i32_1 = arith.constant 0 : i32
    return %c0_i32, %c0_i32_0 : i32, i32
  }
  func.func @transform_5(%arg0: i32) -> (i32, i32, i32) {
    %c0_i32 = arith.constant 0 : i32
    %c0_i32_0 = arith.constant 0 : i32
    %c0_i32_1 = arith.constant 0 : i32
    %c0_i32_2 = arith.constant 0 : i32
    return %c0_i32, %c0_i32_0, %c0_i32_1 : i32, i32, i32
  }
  func.func @transform_6(%arg0: i32) -> (i32, i32) {
    %c0_i32 = arith.constant 0 : i32
    %c0_i32_0 = arith.constant 0 : i32
    %c0_i32_1 = arith.constant 0 : i32
    return %c0_i32, %c0_i32_0 : i32, i32
  }
  func.func @transform_7(%arg0: i32) -> (i32, i32, i32) {
    %c0_i32 = arith.constant 0 : i32
    %c0_i32_0 = arith.constant 0 : i32
    %c0_i32_1 = arith.constant 0 : i32
    return %arg0, %c0_i32, %c0_i32_0 : i32, i32, i32
  }
}

</mosaic_0001>

<bundles_post_ra>
// kernel: tpu_custom_call.1
= control target key start
LH: loop header
LB: loop body
LE: loop exit
PB: predicated region body
PF: predicated region fallthrough
CT: control target
= control target key end

     0   :  { %12 = vsyncpa [#allocation5], 0  ;;  %s2574_s0 = inlined_call_operand.hbm [shape: f32[2,16,128], index: 0, kind: input, shape index: {}]   ;;  %s2575_s1 = inlined_call_operand.hbm [shape: bf16[3,128,128], index: 1, kind: input, shape index: {}]   ;;  %s2576_s2 = inlined_call_operand.vmem [shape: f32[1,128], index: 2, kind: input, shape index: {}]   ;;  %s2577_s3 = inlined_call_operand.hbm [shape: bf16[3,128,128], index: 3, kind: input, shape index: {}]   ;;  %s2578_s4 = inlined_call_operand.vmem [shape: f32[1,128], index: 4, kind: input, shape index: {}]   ;;  %s2579_s5 = inlined_call_operand.hbm [shape: bf16[3,128,128], index: 5, kind: input, shape index: {}]   ;;  %s2580_s6 = inlined_call_operand.vmem [shape: f32[1,128], index: 6, kind: input, shape index: {}]   ;;  %s2581_s7 = inlined_call_operand.hbm [shape: f32[2,1,128], index: 7, kind: output, shape index: {}]  }
   0x1   :  { %14 = vsyncpa [#allocation5 + $0x1], 0 }
   0x2   :  { %15 = vsyncpa [#allocation8], 0 }
   0x3   :  { %16 = vsyncpa [#allocation11], 0 }
   0x4   :  { %17 = vsyncpa [#allocation6], 0 }
   0x5   :  { %19 = vsyncpa [#allocation6 + $0x1], 0  ;;  %s2203_s24 = smov 0   ;;  %s2205_s25 = smov 0  }
   0x6   :  { %s2207_s26 = smov 0   ;;  %s2209_s27 = smov 0  }
   0x7 LB: > { %s2224_s28 = sadd.s32 4294967295, %s2150_s27   ;;  %s1443_s29 = sadd.s32 4294967294, %s2150_s27   ;;  %s2150_s27 = sphi %s2209_s27, %s2607_s27   ;;  %s2146_s26 = sphi %s2207_s26, %s2606_s26   ;;  %s2142_s25 = sphi %s2205_s25, %s2605_s25   ;;  %s2138_s24 = sphi %s2203_s24, %s2604_s24  }
   0x8   : > { %p45_p0 = scmp.ne.s32.totalorder %s2142_s25, %s2138_s24  ;;  %p2582_p1 = scmp.eq.s32.totalorder %s2224_s28, 0 }
   0x9   : > { %p201_p3 = scmp.eq.s32.totalorder %s1443_s29, 1  ;;  %p1444_p5 = scmp.ge.s32.totalorder %s2150_s27, 1 }
   0xa   : > { %p2233_p4 = por %p2582_p1, %p45_p0  ;;  %p208_p7 = scmp.lt.s32.totalorder %s2150_s27, 3 }
   0xb   : > { %p2238_p6 = por %p201_p3, %p45_p0  ;;  %s2152_s10 = smov [#allocation7]  }
   0xc   : > { %s2586_s30 = scalar_select %p2233_p4, 1, 0 }
   0xd   : > { %s2587_s8 = scalar_select %p2238_p6, 1, 0 }
   0xe   : > { %p2243_p8 = pnand %p1444_p5, %p208_p7  ;;  %s220_s11 = sshll.u32 %s2152_s10, 4  ;;  %s2247_s11 = int_to_ptr.vmem [resolvable:$true] %s220_s11 }
   0xf   : > { %2588 = sst [smem:[#allocation17_spill]] %s2587_s8  ;;  %s2153_s13 = smov [#allocation9]  }
  0x10   : > { %s2589_s9 = scalar_select %p2243_p8, 1, 0 }
  0x11   : > { %p1823_p9 = pneg %p2243_p8  ;;  %s236_s14 = sshll.u32 %s2153_s13, 4  ;;  %s2258_s14 = int_to_ptr.vmem [resolvable:$true] %s236_s14 }
  0x12   : > { %s2154_s15 = smov [#allocation10]   ;;  %s1962_s19 = scalar_lea.hbm %s2575_s1, 3072 }
  0x13   : > { %p2254_p11 = pnand %p1823_p9, %p2582_p1  ;;  %s2260_s16 = sshll.u32 %s2154_s15, 4  ;;  %s253_s16 = int_to_ptr.vmem [resolvable:$true] %s2260_s16 }
  0x14   : > { %p1963_p12 = scmp.ne.s32.totalorder %s2575_s1, %s1962_s19  ;;  %p1969_p5 = scmp.lt.u32.totalorder %s1962_s19, %s2575_s1 }
  0x15   : > { %p2270_p13 = pneg %p2254_p11 }
  0x17   : > { %p1965_p0 = pnand %p2270_p13, %p1963_p12 }
  0x19   : > { %p1966_p3 = pneg %p1965_p0 }
  0x1b   : > { %p1971_p7 = pnand %p1969_p5, %p1966_p3 }
  0x1d   : > { %1974 = shalt.err (!%p1971_p7)
}
  0x1e   : > { %s1975_s10 = scalar_lea.vmem %s2247_s11, 3072  ;;  %p1983_p2 = scmp.lt.s32.totalorder %s2247_s11, %s2247_s11 }
  0x1f   : > { %p1976_p9 = scmp.ne.s32.totalorder %s2247_s11, %s1975_s10  ;;  %p1984_p6 = scmp.lt.s32.totalorder %s1975_s10, %s1975_s10 }
  0x21   : > { %p1978_p10 = pnand %p1976_p9, %p2270_p13  ;;  %p1985_p12 = por %p1984_p6, %p1983_p2 }
  0x23   : > { %p1979_p1 = pneg %p1978_p10 }
  0x25   : > { %p1986_p0 = pnand %p1985_p12, %p1979_p1 }
  0x27   : > { %1989 = shalt.err (!%p1986_p0)
}
  0x28   : > { %s2155_s13 = smov 64   ;;  %s2156_s15 = smov 4  }
  0x29   : > { %1826 = dma.hbm_to_vmem [thread:$0]  (!%p2254_p11), %s2575_s1, 3072, %s2247_s11, [#allocation8], %s2155_s13, %s2155_s13, %s2156_s15  }
  0x2a   : > { %s1990_s21 = scalar_lea.hbm %s2577_s3, 3072 }
  0x2b   : > { %p1991_p1 = scmp.ne.s32.totalorder %s2577_s3, %s1990_s21  ;;  %p1997_p10 = scmp.lt.u32.totalorder %s1990_s21, %s2577_s3 }
  0x2d   : > { %p1993_p2 = pnand %p1991_p1, %p2270_p13 }
  0x2f   : > { %p1994_p6 = pneg %p1993_p2 }
  0x31   : > { %p1999_p3 = pnand %p1997_p10, %p1994_p6 }
  0x33   : > { %2002 = shalt.err (!%p1999_p3)
}
  0x34   : > { %s2003_s11 = scalar_lea.vmem %s2258_s14, 3072  ;;  %p2011_p12 = scmp.lt.s32.totalorder %s2258_s14, %s2258_s14 }
  0x35   : > { %p2004_p5 = scmp.ne.s32.totalorder %s2258_s14, %s2003_s11  ;;  %p2012_p0 = scmp.lt.s32.totalorder %s2003_s11, %s2003_s11 }
  0x37   : > { %p2006_p7 = pnand %p2004_p5, %p2270_p13  ;;  %p2013_p1 = por %p2012_p0, %p2011_p12 }
  0x39   : > { %p2007_p9 = pneg %p2006_p7 }
  0x3b   : > { %p2014_p2 = pnand %p2013_p1, %p2007_p9 }
  0x3d   : > { %2017 = shalt.err (!%p2014_p2)
}
  0x3e   : > { %1829 = dma.hbm_to_vmem [thread:$0]  (!%p2254_p11), %s2577_s3, 3072, %s2258_s14, [#allocation8], %s2155_s13, %s2155_s13, %s2156_s15  }
  0x3f   : > { %s2018_s20 = scalar_lea.hbm %s2579_s5, 3072 }
  0x40   : > { %p2019_p6 = scmp.ne.s32.totalorder %s2579_s5, %s2018_s20  ;;  %p2025_p5 = scmp.lt.u32.totalorder %s2018_s20, %s2579_s5 }
  0x42   : > { %p2021_p10 = pnand %p2019_p6, %p2270_p13 }
  0x44   : > { %p2022_p3 = pneg %p2021_p10 }
  0x46   : > { %p2027_p7 = pnand %p2025_p5, %p2022_p3 }
  0x48   : > { %2030 = shalt.err (!%p2027_p7)
}
  0x49   : > { %s2031_s11 = scalar_lea.vmem %s253_s16, 3072  ;;  %p2039_p1 = scmp.lt.s32.totalorder %s253_s16, %s253_s16 }
  0x4a   : > { %p2032_p9 = scmp.ne.s32.totalorder %s253_s16, %s2031_s11  ;;  %p2040_p2 = scmp.lt.s32.totalorder %s2031_s11, %s2031_s11 }
  0x4c   : > { %p2034_p12 = pnand %p2032_p9, %p2270_p13  ;;  %p2041_p4 = por %p2040_p2, %p2039_p1 }
  0x4e   : > { %p2035_p0 = pneg %p2034_p12 }
  0x50   : > { %p2042_p8 = pnand %p2041_p4, %p2035_p0 }
  0x52   : > { %2045 = shalt.err (!%p2042_p8)
}
  0x53   : > { %1832 = dma.hbm_to_vmem [thread:$0]  (!%p2254_p11), %s2579_s5, 3072, %s253_s16, [#allocation11], %s2155_s13, %s2155_s13, %s2156_s15  }
  0x54   : > { %s2343_s22 = sadd.s32 1, %s2150_s27   ;;  %s32_s17 = sadd.s32 1, %s2146_s26 }
  0x55   : > { %s29_s12 = ssub.s32 %s2150_s27, %s2343_s22  ;;  %p39_p8 = scmp.ne.s32.totalorder %s2146_s26, %s2142_s25 }
  0x56   : > { %p30_p4 = scmp.eq.s32.totalorder %s29_s12, 0  ;;  %p40_p13 = scmp.eq.s32.totalorder %s2150_s27, 0 }
  0x57   : > { %p1844_p6 = scmp.lt.s32.totalorder %s2150_s27, 2  ;;  %p2592_p3 = scmp.eq.s32.totalorder %s2224_s28, 1 }
  0x58   : > { %s2353_s18 = scalar_select %p30_p4, %s2146_s26, %s32_s17  }
  0x59   : > { %p41_p10 = por %p40_p13, %p39_p8  ;;  %p2357_p5 = por %p2592_p3, %p39_p8 }
  0x5a   : > { %s269_s20 = sand.u32 1, %s2146_s26   ;;  %s1536_s21 = sshll.u32 %s2150_s27, 8 }
  0x5b   : > { %s1449_s16 = sshll.u32 %s269_s20, 4  ;;  %s2366_s23 = scalar_lea.hbm %s2574_s0, %s1536_s21 }
  0x5c   : > { %s273_s29 = scalar_lea.vmem [#allocation4], %s1449_s16  ;;  %p2368_p11 = pnand %p1844_p6, %p41_p10 }
  0x5d   : > { %s280_s10 = sshll.u32 %s273_s29, 4  ;;  %s2374_s14 = scalar_lea.sflag [#allocation5], %s269_s20  ;;  %s2372_s10 = int_to_ptr.vmem [resolvable:$true] %s280_s10 }
  0x5e   : > { %s2046_s8 = scalar_lea.hbm %s2366_s23, 256  ;;  %p2048_p9 = pneg %p2368_p11 }
  0x5f   : > { %p2047_p7 = scmp.ne.s32.totalorder %s2366_s23, %s2046_s8  ;;  %s2051_s21 = scalar_lea.hbm %s2574_s0, 512 }
  0x60   : > { %p2052_p1 = scmp.lt.u32.totalorder %s2366_s23, %s2574_s0  ;;  %p2053_p2 = scmp.lt.u32.totalorder %s2051_s21, %s2046_s8 }
  0x61   : > { %p2049_p12 = pnand %p2048_p9, %p2047_p7  ;;  %p2055_p8 = scmp.lt.u32.totalorder %s2046_s8, %s2366_s23 }
  0x62   : > { %p2054_p4 = por %p2053_p2, %p2052_p1 }
  0x63   : > { %p2050_p0 = pneg %p2049_p12 }
  0x64   : > { %p2056_p13 = por %p2055_p8, %p2054_p4 }
  0x66   : > { %p2057_p6 = pnand %p2056_p13, %p2050_p0 }
  0x68   : > { %2060 = shalt.err (!%p2057_p6)
}
  0x69   : > { %s2061_s20 = scalar_lea.vmem %s2372_s10, 256  ;;  %s2157_s15 = smov [#allocation4]  }
  0x6a   : > { %p2062_p10 = scmp.ne.s32.totalorder %s2372_s10, %s2061_s20  ;;  %s2066_s29 = sshll.u32 %s2157_s15, 4  ;;  %s2067_s29 = int_to_ptr.vmem [resolvable:$false] %s2066_s29 }
  0x6b   : > { %s2068_s12 = scalar_lea.vmem %s2067_s29, 512  ;;  %p2069_p12 = scmp.lt.s32.totalorder %s2372_s10, %s2067_s29 }
  0x6c   : > { %p2064_p3 = pnand %p2062_p10, %p2048_p9  ;;  %p2070_p1 = scmp.lt.s32.totalorder %s2068_s12, %s2061_s20 }
  0x6e   : > { %p2065_p7 = pneg %p2064_p3  ;;  %p2071_p2 = por %p2070_p1, %p2069_p12 }
  0x70   : > { %p2072_p4 = pnand %p2071_p2, %p2065_p7 }
  0x72   : > { %2075 = shalt.err (!%p2072_p4)
}
  0x73   : > { %s2158_s8 = smov 128   ;;  %s2159_s17 = smov 8  }
  0x74   : > { %1836 = dma.hbm_to_vmem [thread:$0]  (!%p2368_p11), %s2366_s23, 256, %s2372_s10, %s2374_s14, %s2158_s8, %s2158_s8, %s2159_s17  }
  0x75   : > { %p2595_p9 = scmp.ne.s32.totalorder %s2589_s9, 0 }
  0x76   : > { %s2405_s21 = sand.u32 (!%p2595_p9), 1, %s2142_s25   ;;  %p2596_p0 = scmp.ne.s32.totalorder (!%p2595_p9), %s2586_s30, 0 }
  0x77   : > { %292 = sbr.rel (%p2595_p9) target bundleno = 982 (0x3d6), region = 48  ;;  %s1453_s16 = sshll.u32 (!%p2595_p9), %s2405_s21, 4 }
  0x78   : > { %s295_s13 = scalar_lea.sflag (!%p2595_p9), [#allocation5], %s2405_s21  ;;  %s2409_s20 = scalar_lea.vmem (!%p2595_p9), [#allocation4], %s1453_s16 }
  0x7e   : > { %2121 = dma.done.wait (%p2596_p0), %s295_s13, 256  }
  0x7f   : > { %2123 = vsyncadd (%p2596_p0), %s295_s13, 4294967040  ;;  %p2597_p11 = scmp.eq.s32.totalorder %s2224_s28, 0 }
  0x81   : > { %2125 = dma.done.wait (%p2597_p11), [#allocation8], 6144   ;;  %p2598_p8 = pmov %p2597_p11 }
  0x83   : > { %2127 = vsyncadd (%p2598_p8), [#allocation8], 4294961152  ;;  %p2599_p13 = pmov %p2598_p8 }
  0x84   : > { %p2600_p6 = pmov %p2598_p8 }
  0x85   : > { %2129 = dma.done.wait (%p2599_p13), [#allocation11], 3072  }
  0x86   : > { %2131 = vsyncadd (%p2600_p6), [#allocation11], 4294964224  ;;  %v2160_v0 = vmov 0.0   ;;  %vm2161_vm0 = vmmov 0   ;;  %v1890_v1 = vld [vmem:[#allocation7 + $0x40] sm:$0xff]   ;;  %v1891_v2 = vld [vmem:[#allocation7 + $0x48] sm:$0xff]  }
  0x87   : > { %1618 = vmatprep.subr.bf16.mxu1 %v2160_v0  ;;  %1634 = vmatprep.mubr.msk.bf16.mxu1 %vm2161_vm0, %v2160_v0  ;;  %v1892_v3 = vld [vmem:[#allocation7 + $0x50] sm:$0xff]   ;;  %v1898_v4 = vld [vmem:[#allocation7 + $0x80] sm:$0xff]   ;;  %v1893_v5 = vld [vmem:[#allocation7 + $0x58] sm:$0xff]   ;;  %s1533_s15 = sshll.u32 %s2224_s28, 4  ;;  %s339_s29 = scalar_lea.vmem [#allocation12], %s2405_s21 }
  0x88   : > { %1658 = vmatprep.subr.bf16.mxu0 %v2160_v0  ;;  %1674 = vmatprep.mubr.msk.bf16.mxu0 %vm2161_vm0, %v2160_v0  ;;  %v1900_v6 = vld [vmem:[#allocation7 + $0x88] sm:$0xff]   ;;  %v1894_v7 = vld [vmem:[#allocation7 + $0x60] sm:$0xff]   ;;  %v1902_v8 = vld [vmem:[#allocation7 + $0x90] sm:$0xff]   ;;  %s1348_s12 = sshll.u32 %s339_s29, 4  ;;  %s2530_s16 = scalar_lea.hbm %s2581_s7, %s1533_s15  ;;  %s2532_s12 = int_to_ptr.vmem [resolvable:$true] %s1348_s12 }
  0x89   : > { %1619 = vmatpush3.bf16.msra.mxu1 %v1890_v1  ;;  %1659 = vmatpush3.bf16.msra.mxu0 %v1898_v4  ;;  %v1895_v9 = vld [vmem:[#allocation7 + $0x68] sm:$0xff]   ;;  %v1904_v10 = vld [vmem:[#allocation7 + $0x98] sm:$0xff]   ;;  %v1896_v11 = vld [vmem:[#allocation7 + $0x70] sm:$0xff]   ;;  %s1336_s13 = scalar_lea.sflag [#allocation6], %s2405_s21  ;;  %s2076_s28 = scalar_lea.vmem %s2532_s12, 16 }
  0x8a   : > { %1620 = vmatprep.subr.bf16.mxu1 %v2160_v0  ;;  %1660 = vmatprep.subr.bf16.mxu0 %v2160_v0  ;;  %v1906_v12 = vld [vmem:[#allocation7 + $0xa0] sm:$0xff]   ;;  %v1897_v13 = vld [vmem:[#allocation7 + $0x78] sm:$0xff]   ;;  %v1908_v15 = vld [vmem:[#allocation7 + $0xa8] sm:$0xff]   ;;  %p2077_p10 = scmp.ne.s32.totalorder %s2532_s12, %s2076_s28 }
  0x8b   : > { %v1457_v14 = vld [vmem:[%s2409_s20 + $0x1] ss:$2 sm:$0x7f]  ;;  %v1474_v21 = vld [vmem:[%s2409_s20 + $0x2] ss:$2 sm:$0x7f] }
  0x8c   : > { %v1899_v16 = vld [vmem:[#allocation7] sm:$0xff]   ;;  %v1910_v17 = vld [vmem:[#allocation7 + $0xb0] sm:$0xff]   ;;  %v361_v18 = vpack.c.bf16 %v1457_v14, %v1457_v14  ;;  %v1901_v19 = vld [vmem:[#allocation7 + $0x8] sm:$0xff]   ;;  %v557_v23 = vpack.c.bf16 %v1474_v21, %v1474_v21  ;;  %p2078_p3 = pnand %p2077_p10, %p2357_p5 }
  0x8d   : > { %1621 = vmatpush3.bf16.msra.mxu1 %v1891_v2  ;;  %1661 = vmatpush3.bf16.msra.mxu0 %v1900_v6  ;;  %v1912_v20 = vld [vmem:[#allocation7 + $0xb8] sm:$0xff]   ;;  %v1903_v22 = vld [vmem:[#allocation7 + $0x10] sm:$0xff]   ;;  %v1907_v25 = vld [vmem:[#allocation7 + $0x20] sm:$0xff]  }
  0x8e   : > { %1622 = vmatprep.subr.bf16.mxu1 %v2160_v0  ;;  %1662 = vmatprep.subr.bf16.mxu0 %v2160_v0  ;;  %v1905_v24 = vld [vmem:[#allocation7 + $0x18] sm:$0xff]   ;;  %v1909_v26 = vld [vmem:[#allocation7 + $0x28] sm:$0xff]   ;;  %v1911_v27 = vld [vmem:[#allocation7 + $0x30] sm:$0xff]   ;;  %p2079_p7 = pneg %p2078_p3 }
  0x8f   : > { %v1913_v28 = vld [vmem:[#allocation7 + $0x38] sm:$0xff]   ;;  %v1914_v31 = vld [vmem:[#allocation9 + $0x40] sm:$0xff]   ;;  %v1916_v33 = vld [vmem:[#allocation9 + $0x48] sm:$0xff]  }
  0x90   : > { %v341_v29 = vld [vmem:[%s2409_s20] ss:$2 sm:$0x7f]  ;;  %s2162_s20 = smov [#allocation12]  }
  0x91   : > { %1623 = vmatpush3.bf16.msra.mxu1 %v1892_v3  ;;  %1663 = vmatpush3.bf16.msra.mxu0 %v1902_v8  ;;  %v342_v30 = vpack.c.bf16 %v341_v29, %v341_v29  ;;  %v1915_v32 = vld [vmem:[#allocation9] sm:$0xff]   ;;  %v1917_v34 = vld [vmem:[#allocation9 + $0x8] sm:$0xff]   ;;  %v1918_v35 = vld [vmem:[#allocation9 + $0x50] sm:$0xff]   ;;  %s2080_s30 = sshll.u32 %s2162_s20, 4  ;;  %s2081_s30 = int_to_ptr.vmem [resolvable:$false] %s2080_s30 }
  0x92   : > { %1624 = vmatprep.subr.bf16.mxu1 %v2160_v0  ;;  %1664 = vmatprep.subr.bf16.mxu0 %v2160_v0  ;;  %v1919_v36 = vld [vmem:[#allocation9 + $0x10] sm:$0xff]   ;;  %v1920_v37 = vld [vmem:[#allocation9 + $0x58] sm:$0xff]   ;;  %v1922_v39 = vld [vmem:[#allocation9 + $0x60] sm:$0xff]   ;;  %s2082_s9 = scalar_lea.vmem %s2081_s30, 32  ;;  %p2083_p12 = scmp.lt.s32.totalorder %s2532_s12, %s2081_s30 }
  0x93   : > { %v1921_v38 = vld [vmem:[#allocation9 + $0x18] sm:$0xff]   ;;  %v1923_v40 = vld [vmem:[#allocation9 + $0x20] sm:$0xff]   ;;  %v1924_v41 = vld [vmem:[#allocation9 + $0x68] sm:$0xff]   ;;  %p2084_p1 = scmp.lt.s32.totalorder %s2082_s9, %s2076_s28 }
  0x94   : > { %v1925_v42 = vld [vmem:[#allocation9 + $0x28] sm:$0xff]   ;;  %v1926_v43 = vld [vmem:[#allocation9 + $0x70] sm:$0xff]   ;;  %v1928_v45 = vld [vmem:[#allocation9 + $0x78] sm:$0xff]  }
  0x95   : > { %1625 = vmatpush3.bf16.msra.mxu1 %v1893_v5  ;;  %1665 = vmatpush3.bf16.msra.mxu0 %v1904_v10  ;;  %v1927_v44 = vld [vmem:[#allocation9 + $0x30] sm:$0xff]   ;;  %v1929_v46 = vld [vmem:[#allocation9 + $0x38] sm:$0xff]   ;;  %v1930_v1 = vld [vmem:[#allocation9 + $0x80] sm:$0xff]   ;;  %p2085_p2 = por %p2084_p1, %p2083_p12 }
  0x96   : > { %1626 = vmatprep.subr.bf16.mxu1 %v2160_v0  ;;  %1666 = vmatprep.subr.bf16.mxu0 %v2160_v0  ;;  %v1483_v58 = vld [vmem:[%s2576_s2] ss:$0 sm:$0xff]  ;;  %v1931_v6 = vld [vmem:[#allocation9 + $0x88] sm:$0xff]   ;;  %v1933_v8 = vld [vmem:[#allocation9 + $0x98] sm:$0xff]  }
  0x97   : > { %v1935_v10 = vld [vmem:[#allocation9 + $0xa8] sm:$0xff]   ;;  %v1944_v21 = vld [vmem:[#allocation10 + $0x30] sm:$0xff]   ;;  %p2086_p4 = pnand %p2085_p2, %p2079_p7 }
  0x99   : > { %1627 = vmatpush3.bf16.msra.mxu1 %v1894_v7  ;;  %1667 = vmatpush3.bf16.msra.mxu0 %v1906_v12  ;;  %v1932_v7 = vld [vmem:[#allocation9 + $0x90] sm:$0xff]   ;;  %v1937_v12 = vld [vmem:[#allocation9 + $0xb8] sm:$0xff]  }
  0x9a   : > { %1628 = vmatprep.subr.bf16.mxu1 %v2160_v0  ;;  %1668 = vmatprep.subr.bf16.mxu0 %v2160_v0 }
  0x9d   : > { %1629 = vmatpush3.bf16.msra.mxu1 %v1895_v9  ;;  %1669 = vmatpush3.bf16.msra.mxu0 %v1908_v15  ;;  %v1934_v9 = vld [vmem:[#allocation9 + $0xa0] sm:$0xff]  }
  0x9e   : > { %1630 = vmatprep.subr.bf16.mxu1 %v2160_v0  ;;  %1670 = vmatprep.subr.bf16.mxu0 %v2160_v0  ;;  %v1938_v15 = vld [vmem:[#allocation10] sm:$0xff]  }
  0xa1   : > { %1631 = vmatpush3.bf16.msra.mxu1 %v1896_v11  ;;  %1671 = vmatpush3.bf16.msra.mxu0 %v1910_v17  ;;  %v1936_v11 = vld [vmem:[#allocation9 + $0xb0] sm:$0xff]  }
  0xa2   : > { %1632 = vmatprep.subr.bf16.mxu1 %v2160_v0  ;;  %1672 = vmatprep.subr.bf16.mxu0 %v2160_v0  ;;  %v1940_v17 = vld [vmem:[#allocation10 + $0x10] sm:$0xff]  }
  0xa5   : > { %1633 = vmatpush3.bf16.msra.mxu1 %v1897_v13  ;;  %1673 = vmatpush3.bf16.msra.mxu0 %v1912_v20  ;;  %v1943_v20 = vld [vmem:[#allocation10 + $0x28] sm:$0xff]  }
  0xa6   : > { %1638 = vmatprep.subr.bf16.mxu1 %v2160_v0  ;;  %1698 = vmatprep.subr.bf16.mxu0 %v2160_v0 }
  0xa8   : > { %1635 = vmatmul.mubr.bf16.vlgmr.msra.gmra.mrb[0].mxu1 %v361_v18  ;;  %1675 = vmatmul.mubr.bf16.vlgmr.msra.gmra.mrb[0].mxu0 %v557_v23  ;;  %v1941_v18 = vld [vmem:[#allocation10 + $0x18] sm:$0xff]  }
  0xa9   : > { %1639 = vmatpush3.bf16.msra.mxu1 %v1899_v16  ;;  %1654 = vmatprep.mubr.msk.bf16.mxu1 %vm2161_vm0, %v2160_v0  ;;  %v1939_v16 = vld [vmem:[#allocation10 + $0x8] sm:$0xff]  }
  0xaa   : > { %1640 = vmatprep.subr.bf16.mxu1 %v2160_v0  ;;  %1714 = vmatprep.mubr.msk.bf16.mxu0 %vm2161_vm0, %v2160_v0 }
  0xab   : > { %1699 = vmatpush3.bf16.msra.mxu0 %v1915_v32 }
  0xac   : > { %1700 = vmatprep.subr.bf16.mxu0 %v2160_v0 }
  0xad   : > { %1641 = vmatpush3.bf16.msra.mxu1 %v1901_v19  ;;  %v1942_v19 = vld [vmem:[#allocation10 + $0x20] sm:$0xff]  }
  0xae   : > { %1642 = vmatprep.subr.bf16.mxu1 %v2160_v0 }
  0xaf   : > { %1701 = vmatpush3.bf16.msra.mxu0 %v1917_v34 }
  0xb0   : > { %1702 = vmatprep.subr.bf16.mxu0 %v2160_v0 }
  0xb1   : > { %1643 = vmatpush3.bf16.msra.mxu1 %v1903_v22  ;;  %v1945_v22 = vld [vmem:[#allocation10 + $0x38] sm:$0xff]  }
  0xb2   : > { %1644 = vmatprep.subr.bf16.mxu1 %v2160_v0 }
  0xb3   : > { %1703 = vmatpush3.bf16.msra.mxu0 %v1919_v36 }
  0xb4   : > { %1704 = vmatprep.subr.bf16.mxu0 %v2160_v0 }
  0xb5   : > { %1645 = vmatpush3.bf16.msra.mxu1 %v1905_v24 }
  0xb6   : > { %1646 = vmatprep.subr.bf16.mxu1 %v2160_v0 }
  0xb7   : > { %1705 = vmatpush3.bf16.msra.mxu0 %v1921_v38 }
  0xb8   : > { %1706 = vmatprep.subr.bf16.mxu0 %v2160_v0 }
  0xb9   : > { %1647 = vmatpush3.bf16.msra.mxu1 %v1907_v25 }
  0xba   : > { %1648 = vmatprep.subr.bf16.mxu1 %v2160_v0 }
  0xbb   : > { %1707 = vmatpush3.bf16.msra.mxu0 %v1923_v40 }
  0xbc   : > { %1708 = vmatprep.subr.bf16.mxu0 %v2160_v0 }
  0xbd   : > { %1649 = vmatpush3.bf16.msra.mxu1 %v1909_v26 }
  0xbe   : > { %1650 = vmatprep.subr.bf16.mxu1 %v2160_v0 }
  0xbf   : > { %1709 = vmatpush3.bf16.msra.mxu0 %v1925_v42 }
  0xc0   : > { %1710 = vmatprep.subr.bf16.mxu0 %v2160_v0 }
  0xc1   : > { %1651 = vmatpush3.bf16.msra.mxu1 %v1911_v27 }
  0xc2   : > { %1652 = vmatprep.subr.bf16.mxu1 %v2160_v0 }
  0xc3   : > { %1711 = vmatpush3.bf16.msra.mxu0 %v1927_v44  ;;  %v1948_v44 = vld [vmem:[#allocation10 + $0x50] sm:$0xff]  }
  0xc4   : > { %1712 = vmatprep.subr.bf16.mxu0 %v2160_v0 }
  0xc5   : > { %1653 = vmatpush3.bf16.msra.mxu1 %v1913_v28 }
  0xc6   : > { %1678 = vmatprep.subr.bf16.mxu1 %v2160_v0 }
  0xc7   : > { %1713 = vmatpush3.bf16.msra.mxu0 %v1929_v46  ;;  %v1950_v46 = vld [vmem:[#allocation10 + $0x60] sm:$0xff]  }
  0xc8   : > { %1655 = vmatmul.mubr.bf16.vlgmr.msra.gmra.mrb[4].mxu1 %v342_v30  ;;  %1738 = vmatprep.subr.bf16.mxu0 %v2160_v0 }
  0xc9   : > { %1694 = vmatprep.mubr.msk.bf16.mxu1 %vm2161_vm0, %v2160_v0  ;;  %1679 = vmatpush3.bf16.msra.mxu1 %v1914_v31 }
  0xca   : > { %1680 = vmatprep.subr.bf16.mxu1 %v2160_v0 }
  0xcd   : > { %1681 = vmatpush3.bf16.msra.mxu1 %v1916_v33  ;;  %v1508_v33 = vld [vmem:[%s2578_s4] ss:$0 sm:$0xff] }
  0xce   : > { %1682 = vmatprep.subr.bf16.mxu1 %v2160_v0 }
  0xd1   : > { %1683 = vmatpush3.bf16.msra.mxu1 %v1918_v35 }
  0xd2   : > { %1684 = vmatprep.subr.bf16.mxu1 %v2160_v0 }
  0xd5   : > { %1685 = vmatpush3.bf16.msra.mxu1 %v1920_v37 }
  0xd6   : > { %1686 = vmatprep.subr.bf16.mxu1 %v2160_v0 }
  0xd9   : > { %1687 = vmatpush3.bf16.msra.mxu1 %v1922_v39 }
  0xda   : > { %1688 = vmatprep.subr.bf16.mxu1 %v2160_v0 }
  0xdd   : > { %1689 = vmatpush3.bf16.msra.mxu1 %v1924_v41  ;;  %v1946_v41 = vld [vmem:[#allocation10 + $0x40] sm:$0xff]  }
  0xde   : > { %1690 = vmatprep.subr.bf16.mxu1 %v2160_v0 }
  0xe1   : > { %1691 = vmatpush3.bf16.msra.mxu1 %v1926_v43  ;;  %v1947_v43 = vld [vmem:[#allocation10 + $0x48] sm:$0xff]  }
  0xe2   : > { %1692 = vmatprep.subr.bf16.mxu1 %v2160_v0 }
  0xe5   : > { %1693 = vmatpush3.bf16.msra.mxu1 %v1928_v45  ;;  %v1949_v45 = vld [vmem:[#allocation10 + $0x58] sm:$0xff]  }
  0xe6   : > { %1718 = vmatprep.subr.bf16.mxu1 %v2160_v0 }
 0x17b   : > { %v461_v47 = vpop.f32.mrb[0].mxu1  ;;  %v657_v51 = vpop.f32.mrb[0].mxu0 }
 0x17c   : > { %v1636_v48 = vpop.f32.mrb[1].mxu1  ;;  %v1676_v52 = vpop.f32.mrb[1].mxu0 }
 0x17d   : > { %v464_v49 = vpop.f32.mrb[2].mxu1  ;;  %v660_v53 = vpop.f32.mrb[2].mxu0  ;;  %v1952_v48 = vld [vmem:[#allocation10 + $0x70] sm:$0xff]   ;;  %v1955_v52 = vld [vmem:[#allocation10 + $0x88] sm:$0xff]  }
 0x17e   : > { %v1637_v50 = vpop.f32.mrb[3].mxu1  ;;  %v1677_v54 = vpop.f32.mrb[3].mxu0  ;;  %v1953_v49 = vld [vmem:[#allocation10 + $0x78] sm:$0xff]   ;;  %v1956_v53 = vld [vmem:[#allocation10 + $0x90] sm:$0xff]  }
 0x17f   : > { %v1954_v50 = vld [vmem:[#allocation10 + $0x80] sm:$0xff]   ;;  %v1957_v54 = vld [vmem:[#allocation10 + $0x98] sm:$0xff]  }
 0x19b   : > { %v549_v55 = vpop.f32.mrb[4].mxu1 }
 0x19c   : > { %v550_v56 = vadd.f32 %v549_v55, %v461_v47  ;;  %v1656_v57 = vpop.f32.mrb[5].mxu1  ;;  %v1951_v47 = vld [vmem:[#allocation10 + $0x68] sm:$0xff]   ;;  %v1958_v55 = vld [vmem:[#allocation10 + $0xa0] sm:$0xff]  }
 0x19d   : > { %v552_v59 = vpop.f32.mrb[6].mxu1  ;;  %v1960_v57 = vld [vmem:[#allocation10 + $0xb0] sm:$0xff]  }
 0x19e   : > { %v663_v60 = vadd.f32 %v657_v51, %v550_v56  ;;  %v1657_v61 = vpop.f32.mrb[7].mxu1  ;;  %v1959_v56 = vld [vmem:[#allocation10 + $0xa8] sm:$0xff]  }
 0x1a0   : > { %v671_v62 = vadd.f32 %v1483_v58, %v663_v60  ;;  %v1961_v58 = vld [vmem:[#allocation10 + $0xb8] sm:$0xff]   ;;  %v1008_v60 = vld [vmem:[%s2580_s6] sm:$0x1] }
 0x1a2   : > { %v672_v63 = vmax.f32 %v671_v62, 0.0 }
 0x1a4   : > { %673 = vst [vmem:[#allocation2] sm:$0x7f] %v672_v63 }
 0x1ab   : > { %v693_v2 = vld [vmem:[#allocation2 + $0x1] ss:$2 sm:$0x7]  ;;  %v674_v3 = vld [vmem:[#allocation2] ss:$2 sm:$0x7] }
 0x1ac   : > { %v694_v4 = vpack.c.bf16 %v693_v2, %v693_v2  ;;  %v675_v5 = vpack.c.bf16 %v674_v3, %v674_v3  ;;  %v889_v13 = vld [vmem:[#allocation2 + $0x2] ss:$2 sm:$0x7] }
 0x1ad   : > { %v890_v14 = vpack.c.bf16 %v889_v13, %v889_v13 }
 0x1ae   : > { %1695 = vmatmul.mubr.bf16.vlgmr.msra.gmra.mrb[8].mxu1 %v694_v4  ;;  %1715 = vmatmul.mubr.bf16.vlgmr.msra.gmra.mrb[4].mxu0 %v675_v5 }
 0x1af   : > { %1719 = vmatpush3.bf16.msra.mxu1 %v1930_v1  ;;  %1734 = vmatprep.mubr.msk.bf16.mxu1 %vm2161_vm0, %v2160_v0 }
 0x1b0   : > { %1720 = vmatprep.subr.bf16.mxu1 %v2160_v0  ;;  %1754 = vmatprep.mubr.msk.bf16.mxu0 %vm2161_vm0, %v2160_v0 }
 0x1b1   : > { %1739 = vmatpush3.bf16.msra.mxu0 %v1938_v15 }
 0x1b2   : > { %1740 = vmatprep.subr.bf16.mxu0 %v2160_v0 }
 0x1b3   : > { %1721 = vmatpush3.bf16.msra.mxu1 %v1931_v6 }
 0x1b4   : > { %1722 = vmatprep.subr.bf16.mxu1 %v2160_v0 }
 0x1b5   : > { %1741 = vmatpush3.bf16.msra.mxu0 %v1939_v16 }
 0x1b6   : > { %1742 = vmatprep.subr.bf16.mxu0 %v2160_v0 }
 0x1b7   : > { %1723 = vmatpush3.bf16.msra.mxu1 %v1932_v7 }
 0x1b8   : > { %1724 = vmatprep.subr.bf16.mxu1 %v2160_v0 }
 0x1b9   : > { %1743 = vmatpush3.bf16.msra.mxu0 %v1940_v17 }
 0x1ba   : > { %1744 = vmatprep.subr.bf16.mxu0 %v2160_v0 }
 0x1bb   : > { %1725 = vmatpush3.bf16.msra.mxu1 %v1933_v8 }
 0x1bc   : > { %1726 = vmatprep.subr.bf16.mxu1 %v2160_v0 }
 0x1bd   : > { %1745 = vmatpush3.bf16.msra.mxu0 %v1941_v18 }
 0x1be   : > { %1746 = vmatprep.subr.bf16.mxu0 %v2160_v0 }
 0x1bf   : > { %1727 = vmatpush3.bf16.msra.mxu1 %v1934_v9 }
 0x1c0   : > { %1728 = vmatprep.subr.bf16.mxu1 %v2160_v0 }
 0x1c1   : > { %1747 = vmatpush3.bf16.msra.mxu0 %v1942_v19 }
 0x1c2   : > { %1748 = vmatprep.subr.bf16.mxu0 %v2160_v0 }
 0x1c3   : > { %1729 = vmatpush3.bf16.msra.mxu1 %v1935_v10 }
 0x1c4   : > { %1730 = vmatprep.subr.bf16.mxu1 %v2160_v0 }
 0x1c5   : > { %1749 = vmatpush3.bf16.msra.mxu0 %v1943_v20 }
 0x1c6   : > { %1750 = vmatprep.subr.bf16.mxu0 %v2160_v0 }
 0x1c7   : > { %1731 = vmatpush3.bf16.msra.mxu1 %v1936_v11 }
 0x1c8   : > { %1732 = vmatprep.subr.bf16.mxu1 %v2160_v0 }
 0x1c9   : > { %1751 = vmatpush3.bf16.msra.mxu0 %v1944_v21 }
 0x1ca   : > { %1752 = vmatprep.subr.bf16.mxu0 %v2160_v0 }
 0x1cb   : > { %1733 = vmatpush3.bf16.msra.mxu1 %v1937_v12 }
 0x1cd   : > { %1753 = vmatpush3.bf16.msra.mxu0 %v1945_v22 }
 0x1ce   : > { %1735 = vmatmul.mubr.bf16.vlgmr.msra.gmra.mrb[12].mxu1 %v890_v14  ;;  %1758 = vmatprep.subr.bf16.mxu0 %v2160_v0 }
 0x281   : > { %v794_v23 = vpop.f32.mrb[8].mxu1  ;;  %v882_v24 = vpop.f32.mrb[4].mxu0 }
 0x282   : > { %v883_v25 = vadd.f32 %v882_v24, %v794_v23  ;;  %v1696_v26 = vpop.f32.mrb[9].mxu1  ;;  %v1716_v27 = vpop.f32.mrb[5].mxu0 }
 0x283   : > { %v797_v28 = vpop.f32.mrb[10].mxu1  ;;  %v885_v29 = vpop.f32.mrb[6].mxu0 }
 0x284   : > { %v1697_v30 = vpop.f32.mrb[11].mxu1  ;;  %v1717_v31 = vpop.f32.mrb[7].mxu0 }
 0x2a1   : > { %v990_v32 = vpop.f32.mrb[12].mxu1 }
 0x2a2   : > { %v996_v34 = vadd.f32 %v990_v32, %v883_v25  ;;  %v1736_v35 = vpop.f32.mrb[13].mxu1 }
 0x2a3   : > { %v993_v36 = vpop.f32.mrb[14].mxu1 }
 0x2a4   : > { %v1004_v37 = vadd.f32 %v1508_v33, %v996_v34  ;;  %v1737_v38 = vpop.f32.mrb[15].mxu1 }
 0x2a6   : > { %v1005_v39 = vmax.f32 %v1004_v37, 0.0 }
 0x2a8   : > { %1006 = vst [vmem:[#allocation3] sm:$0x7] %v1005_v39 }
 0x2af   : > { %v1007_v40 = vld [vmem:[#allocation3] sm:$0x7] }
 0x2b0   : > { %v1009_v42 = vpack.c.bf16 %v1007_v40, %v1007_v40 }
 0x2b2   : > { %1755 = vmatmul.mubr.bf16.vlgmr.msra.gmra.mrb[8].mxu0 %v1009_v42  ;;  %v1133_v51 = vshrl.u32 %v1009_v42, 16  ;;  %v1243_v59 = vrot.slane %v1009_v42, 1 }
 0x2b3   : > { %1759 = vmatpush3.bf16.msra.mxu0 %v1946_v41  ;;  %1774 = vmatprep.mubr.msk.bf16.mxu0 %vm2161_vm0, %v2160_v0 }
 0x2b4   : > { %1760 = vmatprep.subr.bf16.mxu0 %v2160_v0 }
 0x2b7   : > { %1761 = vmatpush3.bf16.msra.mxu0 %v1947_v43 }
 0x2b8   : > { %1762 = vmatprep.subr.bf16.mxu0 %v2160_v0 }
 0x2bb   : > { %1763 = vmatpush3.bf16.msra.mxu0 %v1948_v44 }
 0x2bc   : > { %1764 = vmatprep.subr.bf16.mxu0 %v2160_v0 }
 0x2bf   : > { %1765 = vmatpush3.bf16.msra.mxu0 %v1949_v45 }
 0x2c0   : > { %1766 = vmatprep.subr.bf16.mxu0 %v2160_v0 }
 0x2c3   : > { %1767 = vmatpush3.bf16.msra.mxu0 %v1950_v46 }
 0x2c4   : > { %1768 = vmatprep.subr.bf16.mxu0 %v2160_v0 }
 0x2c7   : > { %1769 = vmatpush3.bf16.msra.mxu0 %v1951_v47 }
 0x2c8   : > { %1770 = vmatprep.subr.bf16.mxu0 %v2160_v0 }
 0x2cb   : > { %1771 = vmatpush3.bf16.msra.mxu0 %v1952_v48 }
 0x2cc   : > { %1772 = vmatprep.subr.bf16.mxu0 %v2160_v0 }
 0x2cf   : > { %1773 = vmatpush3.bf16.msra.mxu0 %v1953_v49 }
 0x2d0   : > { %1778 = vmatprep.subr.bf16.mxu0 %v2160_v0 }
 0x2d2   : > { %1775 = vmatmul.mubr.bf16.vlgmr.msra.gmra.mrb[8].mxu0 %v1133_v51 }
 0x2d3   : > { %1779 = vmatpush3.bf16.msra.mxu0 %v1954_v50  ;;  %1794 = vmatprep.mubr.msk.bf16.mxu0 %vm2161_vm0, %v2160_v0 }
 0x2d4   : > { %1780 = vmatprep.subr.bf16.mxu0 %v2160_v0 }
 0x2d7   : > { %1781 = vmatpush3.bf16.msra.mxu0 %v1955_v52 }
 0x2d8   : > { %1782 = vmatprep.subr.bf16.mxu0 %v2160_v0 }
 0x2db   : > { %1783 = vmatpush3.bf16.msra.mxu0 %v1956_v53 }
 0x2dc   : > { %1784 = vmatprep.subr.bf16.mxu0 %v2160_v0 }
 0x2df   : > { %1785 = vmatpush3.bf16.msra.mxu0 %v1957_v54 }
 0x2e0   : > { %1786 = vmatprep.subr.bf16.mxu0 %v2160_v0 }
 0x2e3   : > { %1787 = vmatpush3.bf16.msra.mxu0 %v1958_v55 }
 0x2e4   : > { %1788 = vmatprep.subr.bf16.mxu0 %v2160_v0 }
 0x2e7   : > { %1789 = vmatpush3.bf16.msra.mxu0 %v1959_v56 }
 0x2e8   : > { %1790 = vmatprep.subr.bf16.mxu0 %v2160_v0 }
 0x2eb   : > { %1791 = vmatpush3.bf16.msra.mxu0 %v1960_v57 }
 0x2ec   : > { %1792 = vmatprep.subr.bf16.mxu0 %v2160_v0 }
 0x2ef   : > { %1793 = vmatpush3.bf16.msra.mxu0 %v1961_v58 }
 0x2f2   : > { %1795 = vmatmul.mubr.bf16.vlgmr.msra.gmra.mrb[8].mxu0 %v1243_v59 }
 0x3c5   : > { %v1327_v61 = vpop.f32.mrb[8].mxu0 }
 0x3c6   : > { %v1798_v62 = vadd.f32 %v1327_v61, %v1008_v60  ;;  %v1796_v63 = vpop.f32.mrb[9].mxu0 }
 0x3c7   : > { %v1330_v0 = vpop.f32.mrb[10].mxu0 }
 0x3c8   : > { %1334 = vst [vmem:[%s339_s29] sm:$0x1] %v1798_v62  ;;  %v1797_v1 = vpop.f32.mrb[11].mxu0 }
 0x3c9   : > { %2089 = shalt.err (!%p2086_p4)
}
 0x3ca   : > { %s2090_s21 = scalar_lea.hbm %s2530_s16, 16  ;;  %s2094_s11 = scalar_lea.hbm %s2581_s7, 32 }
 0x3cb   : > { %p2091_p9 = scmp.ne.s32.totalorder %s2530_s16, %s2090_s21  ;;  %p2095_p8 = scmp.lt.u32.totalorder %s2530_s16, %s2581_s7 }
 0x3cc   : > { %p2096_p13 = scmp.lt.u32.totalorder %s2094_s11, %s2090_s21  ;;  %p2098_p10 = scmp.lt.u32.totalorder %s2090_s21, %s2530_s16 }
 0x3cd   : > { %p2092_p0 = pnand %p2091_p9, %p2357_p5 }
 0x3ce   : > { %p2097_p6 = por %p2096_p13, %p2095_p8 }
 0x3cf   : > { %p2093_p11 = pneg %p2092_p0 }
 0x3d0   : > { %p2099_p3 = por %p2098_p10, %p2097_p6 }
 0x3d2   : > { %p2100_p7 = pnand %p2099_p3, %p2093_p11 }
 0x3d4   : > { %2103 = shalt.err (!%p2100_p7)
}
 0x3d5   : > { %1821 = dma.vmem_to_hbm [thread:$0]  (%p2357_p5), %s2532_s12, 16, %s2530_s16, %s1336_s13  }
 0x3d6 PF: > { %s2601_s29 = sld [smem:[#allocation17_spill]]  ;;  %s1360_s8 = sand.u32 1, %s2138_s24  }
 0x3d7   : > { %p2603_p1 = scmp.ge.s32.totalorder %s2150_s27, 2  ;;  %s1361_s17 = scalar_lea.sflag [#allocation6], %s1360_s8 }
 0x3dc   : > { %p2602_p12 = scmp.ne.s32.totalorder %s2601_s29, 0 }
 0x3de   : > { %p1838_p2 = pnand %p2603_p1, %p2602_p12 }
 0x3e0   : > { %2133 = dma.done.wait (!%p1838_p2), %s1361_s17, 16  }
 0x3e1   : > { %2135 = vsyncadd (!%p1838_p2), %s1361_s17, 4294967280  ;;  %p22_p4 = scmp.ge.s32.totalorder %s2343_s22, 4   ;;  %s2604_s24 = smov %s2142_s25 }
 0x3e2   : > { %s2605_s25 = smov %s2146_s26  ;;  %s2606_s26 = smov %s2353_s18 }
 0x3e3   : > { %s2607_s27 = smov %s2343_s22  ;;  %24 = sbr.rel (!%p22_p4) target bundleno = 7 (0x7), region = 115 }
 0x3ea   :  { %1365 = vsyncpa [#allocation5], 1 }
 0x3eb   :  { %1367 = vsyncpa [#allocation5 + $0x1], 1 }
 0x3ec   :  { %1368 = vsyncpa [#allocation8], 1 }
 0x3ed   :  { %1369 = vsyncpa [#allocation11], 1 }
 0x3ee   :  { %1370 = vsyncpa [#allocation6], 1 }
 0x3ef   :  { %1372 = vsyncpa [#allocation6 + $0x1], 1 }

</bundles_post_ra>
